<compile_context>
chip_gen: v6e
topology: v6e:2x2x1
jax: 0.10.0
libtpu: 0.0.40
codegen_flags: <defaults>
</compile_context>

<pallas_src>
import functools

import jax
import jax.numpy as jnp
from jax.experimental import pallas as pl
from jax.experimental.pallas import tpu as pltpu


def _round_up(x, m):
    return ((x + m - 1) // m) * m


def _pick_tile_hw(hw, bytes_per_pixel, budget_bytes=4 * 1024 * 1024):
    """Largest multiple-of-128 divisor of `hw` whose dominant input tile fits
    `budget_bytes` (per buffer; the pipeline double-buffers on top of this).
    Falls back to the full extent, which is always a legal block shape."""
    cap = max(128, budget_bytes // max(1, bytes_per_pixel))
    cap = (cap // 128) * 128
    best = None
    t = 128
    limit = min(hw, cap)
    while t <= limit:
        if hw % t == 0:
            best = t
        t += 128
    return best if best is not None else hw


# --------------------------------------------------------------------------
# Kernel 1: per-pixel CE loss, target-class probability, valid mask
# --------------------------------------------------------------------------
def _ohem_stats_kernel(ignore_label, n_batch, logits_ref, tgt_ref,
                       loss_ref, prob_ref, valid_ref):
    # logits_ref: (N, C, T)  original dtype; classes on sublanes, pixels on lanes
    # tgt_ref:    (N, T)     int32
    # outputs:    (N, T)     float32, lane-dense stores (full 128-lane vst)
    tgt_all = tgt_ref[...]
    c, t = logits_ref.shape[1], logits_ref.shape[2]
    cls = jax.lax.broadcasted_iota(jnp.int32, (c, t), 0)          # hoisted

    for n in range(n_batch):                                      # small, static
        lg = logits_ref[n].astype(jnp.float32)                    # (C, T)
        tg = tgt_all[n:n + 1, :]                                  # (1, T)

        valid = tg != ignore_label                                # (1, T)
        safe_tg = jnp.where(valid, tg, 0)

        # log-sum-exp over classes (sublane axis)
        m = jnp.max(lg, axis=0, keepdims=True)                    # (1, T)
        ex = jnp.exp(lg - m)                                      # (C, T)
        sum_ex = jnp.sum(ex, axis=0, keepdims=True)               # (1, T)
        lse = m + jnp.log(sum_ex)                                 # (1, T)

        # gather target-class logit / exp via one-hot (no dynamic gather)
        onehot = cls == safe_tg                                   # (C, T)
        tgt_logit = jnp.sum(jnp.where(onehot, lg, 0.0), axis=0, keepdims=True)
        tgt_ex = jnp.sum(jnp.where(onehot, ex, 0.0), axis=0, keepdims=True)

        loss = lse - tgt_logit            # CE loss (reduction='none')
        prob = tgt_ex / sum_ex            # softmax prob of target class

        loss_ref[pl.ds(n, 1), :] = jnp.where(valid, loss, 0.0)
        prob_ref[pl.ds(n, 1), :] = jnp.where(valid, prob, jnp.inf)  # invalid -> last
        valid_ref[pl.ds(n, 1), :] = valid.astype(jnp.float32)


def _ohem_stats(score_nchw, target_nhw, ignore_label):
    N, C, H, W = score_nchw.shape
    HW = H * W
    logits = score_nchw.reshape(N, C, HW)            # free reshape, keep dtype
    tgt = target_nhw.reshape(N, HW).astype(jnp.int32)

    c_pad = _round_up(max(C, 1), 8)
    itemsize = max(jnp.dtype(logits.dtype).itemsize, 4)   # f32 temporaries
    t_hw = _pick_tile_hw(HW, N * c_pad * itemsize)
    n_t = HW // t_hw

    kernel = functools.partial(_ohem_stats_kernel, int(ignore_label), N)
    out_sds = jax.ShapeDtypeStruct((N, HW), jnp.float32)
    loss, prob, valid = pl.pallas_call(
        kernel,
        grid=(n_t,),
        in_specs=[
            pl.BlockSpec((N, C, t_hw), lambda i: (0, 0, i)),
            pl.BlockSpec((N, t_hw), lambda i: (0, i)),
        ],
        out_specs=(
            pl.BlockSpec((N, t_hw), lambda i: (0, i)),
            pl.BlockSpec((N, t_hw), lambda i: (0, i)),
            pl.BlockSpec((N, t_hw), lambda i: (0, i)),
        ),
        out_shape=(out_sds, out_sds, out_sds),
        compiler_params=pltpu.CompilerParams(
            dimension_semantics=("parallel",),
            vmem_limit_bytes=32 * 1024 * 1024),
    )(logits, tgt)
    return loss, prob, valid


# --------------------------------------------------------------------------
# Kernel 2: masked sum / count reduction under OHEM threshold
# --------------------------------------------------------------------------
def _ohem_reduce_kernel(thr_ref, loss_ref, prob_ref, valid_ref, sum_ref, cnt_ref):
    @pl.when(pl.program_id(0) == 0)
    def _():
        sum_ref[...] = jnp.zeros_like(sum_ref)
        cnt_ref[...] = jnp.zeros_like(cnt_ref)

    thr = thr_ref[0]                                           # SMEM scalar
    keep = (prob_ref[...] < thr) & (valid_ref[...] > 0.5)      # (N, T) bool
    part_sum = jnp.sum(jnp.where(keep, loss_ref[...], 0.0))
    part_cnt = jnp.sum(keep.astype(jnp.float32))
    sum_ref[...] = sum_ref[...] + part_sum
    cnt_ref[...] = cnt_ref[...] + part_cnt


def _ohem_reduce(loss, prob, valid, threshold):
    N, HW = loss.shape
    t_hw = _pick_tile_hw(HW, N * 3 * 4)
    n_t = HW // t_hw
    thr = jnp.reshape(threshold.astype(jnp.float32), (1,))

    s, c = pl.pallas_call(
        _ohem_reduce_kernel,
        grid=(n_t,),
        in_specs=[
            pl.BlockSpec(memory_space=pltpu.MemorySpace.SMEM),   # scalar threshold
            pl.BlockSpec((N, t_hw), lambda i: (0, i)),
            pl.BlockSpec((N, t_hw), lambda i: (0, i)),
            pl.BlockSpec((N, t_hw), lambda i: (0, i)),
        ],
        out_specs=(
            pl.BlockSpec((1, 1), lambda i: (0, 0)),
            pl.BlockSpec((1, 1), lambda i: (0, 0)),
        ),
        out_shape=(jax.ShapeDtypeStruct((1, 1), jnp.float32),
                   jax.ShapeDtypeStruct((1, 1), jnp.float32)),
        compiler_params=pltpu.CompilerParams(
            dimension_semantics=("arbitrary",),
            vmem_limit_bytes=32 * 1024 * 1024),
    )(thr, loss, prob, valid)
    return s[0, 0], c[0, 0]


# --------------------------------------------------------------------------
# Module-equivalent wrapper
# --------------------------------------------------------------------------
class OhemCrossEntropy:
    """JAX/Pallas port of util/loss.py::OhemCrossEntropy forward pass."""

    def __init__(self, ignore_label=255, thres=0.9, min_kept=100000, weight=None):
        self.thresh = float(thres)
        self.min_kept = max(1, int(min_kept))
        self.ignore_label = int(ignore_label)
        # TODO(synk): per-class `weight` not implemented (module default is None).
        assert weight is None, "class weights not supported in this port"

    def _ce_forward(self, score_nchw, target_nhw):
        # CrossEntropyLoss(reduction='none', ignore_index=...) -> (N, H, W)
        N, C, H, W = score_nchw.shape
        loss, _, _ = _ohem_stats(score_nchw, target_nhw, self.ignore_label)
        return loss.reshape(N, H, W)

    def _ohem_forward(self, score_nchw, target_nhw):
        loss, prob, valid = _ohem_stats(score_nchw, target_nhw, self.ignore_label)

        prob_flat = prob.reshape(-1)                 # invalid pixels carry +inf
        P = prob_flat.shape[0]
        n_valid = jnp.sum(valid).astype(jnp.int32)

        # k-th smallest valid probability via top_k (cheaper than a full sort).
        k_static = int(min(self.min_kept + 1, P))
        neg_topk, _ = jax.lax.top_k(-prob_flat, k_static)
        smallest = -neg_topk                         # ascending smallest probs
        k = jnp.clip(jnp.minimum(jnp.int32(self.min_kept), n_valid - 1),
                     0, k_static - 1)
        min_value = smallest[k]
        threshold = jnp.maximum(min_value, jnp.float32(self.thresh))

        s, c = _ohem_reduce(loss, prob, valid, threshold)
        # Guard the degenerate "nothing kept" case (PyTorch's empty mean is NaN).
        return s / jnp.maximum(c, 1.0)

    # -- forward (mirrors the PyTorch module, including the reduction='none'
    #    CE branch that broadcasts against the scalar OHEM term) -------------
    def __call__(self, score, target):
        if not isinstance(score, (list, tuple)):
            score = [score]
        balance_weights = [0.4, 1.0]
        sb_weights = 1.0
        if len(balance_weights) == len(score):
            functions = [self._ce_forward] * (len(balance_weights) - 1) + \
                        [self._ohem_forward]
            return sum(w * f(x, target)
                       for w, x, f in zip(balance_weights, score, functions))
        elif len(score) == 1:
            return sb_weights * self._ohem_forward(score[0], target)
        else:
            raise ValueError("lengths of prediction and target are not identical!")


# --------------------------------------------------------------------------
if __name__ == "__main__":
    key = jax.random.PRNGKey(0)
    k1, k2, k3 = jax.random.split(key, 3)

    N, C, H, W = 2, 4, 16, 16
    score = jax.random.normal(k1, (N, C, H, W), jnp.float32)
    target = jax.random.randint(k2, (N, H, W), 0, C).astype(jnp.int32)
    # sprinkle ~10% ignore pixels
    ignore_mask = jax.random.bernoulli(k3, 0.1, (N, H, W))
    target = jnp.where(ignore_mask, 255, target)

    loss_fn = OhemCrossEntropy(ignore_label=255, thres=0.9, min_kept=64)

    out = loss_fn(score, target)                      # single-score OHEM path
    jax.block_until_ready(out)
    assert out.shape == () and bool(jnp.isfinite(out))

    out2 = loss_fn([score, score], target)            # two-head path (CE map + OHEM)
    jax.block_until_ready(out2)
    assert out2.shape == (N, H, W) and bool(jnp.all(jnp.isfinite(out2)))

    print("KERNEL_OK")
</pallas_src>

<mosaic_0001>
module attributes {stable_mosaic.version = 11 : i64} {
  func.func @_ohem_stats_kernel(%arg0: i32, %arg1: memref<2x4x256xf32, #tpu.memory_space<vmem>>, %arg2: memref<2x256xi32, #tpu.memory_space<vmem>>, %arg3: memref<2x256xf32, #tpu.memory_space<vmem>>, %arg4: memref<2x256xf32, #tpu.memory_space<vmem>>, %arg5: memref<2x256xf32, #tpu.memory_space<vmem>>) attributes {dimension_semantics = [#tpu.dimension_semantics<parallel>], iteration_bounds = array<i64: 1>, scalar_prefetch = 0 : i64, scratch_operands = 0 : i64, tpu.core_type = #tpu.core_type<tc>, window_params = [{transform_indices = @transform_0, window_bounds = array<i64: 2, 4, 256>}, {transform_indices = @transform_1, window_bounds = array<i64: 2, 256>}, {transform_indices = @transform_2, window_bounds = array<i64: 2, 256>}, {transform_indices = @transform_3, window_bounds = array<i64: 2, 256>}, {transform_indices = @transform_4, window_bounds = array<i64: 2, 256>}]} {
    %c0 = arith.constant 0 : index
    %c0_0 = arith.constant 0 : index
    %0 = vector.load %arg2[%c0, %c0_0] : memref<2x256xi32, #tpu.memory_space<vmem>>, vector<2x256xi32>
    %1 = tpu.iota {dimensions = array<i32: 0>} : vector<4x256xi32>
    %c0_1 = arith.constant 0 : index
    %c0_2 = arith.constant 0 : index
    %c0_3 = arith.constant 0 : index
    %2 = vector.load %arg1[%c0_1, %c0_2, %c0_3] : memref<2x4x256xf32, #tpu.memory_space<vmem>>, vector<1x4x256xf32>
    %3 = vector.shape_cast %2 : vector<1x4x256xf32> to vector<4x256xf32>
    %4 = vector.extract_strided_slice %0 {offsets = [0, 0], sizes = [1, 256], strides = [1, 1]} : vector<2x256xi32> to vector<1x256xi32>
    %c255_i32 = arith.constant 255 : i32
    %5 = vector.broadcast %c255_i32 : i32 to vector<1x256xi32>
    %6 = arith.cmpi ne, %4, %5 : vector<1x256xi32>
    %c0_i32 = arith.constant 0 : i32
    %7 = vector.broadcast %c0_i32 : i32 to vector<1x256xi32>
    %8 = arith.select %6, %4, %7 : vector<1x256xi1>, vector<1x256xi32>
    %cst = arith.constant dense<0xFF800000> : vector<256xf32>
    %9 = vector.multi_reduction <maximumf>, %3, %cst [0] : vector<4x256xf32> to vector<256xf32>
    %10 = vector.shape_cast %9 : vector<256xf32> to vector<1x256xf32>
    %11 = vector.broadcast %10 : vector<1x256xf32> to vector<4x256xf32>
    %12 = arith.subf %3, %11 : vector<4x256xf32>
    %13 = math.exp %12 : vector<4x256xf32>
    %cst_4 = arith.constant dense<0.000000e+00> : vector<256xf32>
    %14 = vector.multi_reduction <add>, %13, %cst_4 [0] : vector<4x256xf32> to vector<256xf32>
    %15 = vector.shape_cast %14 : vector<256xf32> to vector<1x256xf32>
    %16 = math.log %15 : vector<1x256xf32>
    %17 = arith.addf %10, %16 : vector<1x256xf32>
    %18 = vector.broadcast %8 : vector<1x256xi32> to vector<4x256xi32>
    %19 = arith.cmpi eq, %1, %18 : vector<4x256xi32>
    %cst_5 = arith.constant 0.000000e+00 : f32
    %20 = vector.broadcast %cst_5 : f32 to vector<4x256xf32>
    %21 = arith.select %19, %3, %20 : vector<4x256xi1>, vector<4x256xf32>
    %cst_6 = arith.constant dense<0.000000e+00> : vector<256xf32>
    %22 = vector.multi_reduction <add>, %21, %cst_6 [0] : vector<4x256xf32> to vector<256xf32>
    %23 = vector.shape_cast %22 : vector<256xf32> to vector<1x256xf32>
    %cst_7 = arith.constant 0.000000e+00 : f32
    %24 = vector.broadcast %cst_7 : f32 to vector<4x256xf32>
    %25 = arith.select %19, %13, %24 : vector<4x256xi1>, vector<4x256xf32>
    %cst_8 = arith.constant dense<0.000000e+00> : vector<256xf32>
    %26 = vector.multi_reduction <add>, %25, %cst_8 [0] : vector<4x256xf32> to vector<256xf32>
    %27 = vector.shape_cast %26 : vector<256xf32> to vector<1x256xf32>
    %28 = arith.subf %17, %23 : vector<1x256xf32>
    %29 = arith.divf %27, %15 : vector<1x256xf32>
    %cst_9 = arith.constant 0.000000e+00 : f32
    %30 = vector.broadcast %cst_9 : f32 to vector<1x256xf32>
    %31 = arith.select %6, %28, %30 : vector<1x256xi1>, vector<1x256xf32>
    %c0_10 = arith.constant 0 : index
    %c0_11 = arith.constant 0 : index
    %32 = vector.load %arg3[%c0_10, %c0_11] : memref<2x256xf32, #tpu.memory_space<vmem>>, vector<1x256xf32>
    tpu.vector_store %arg3[%c0_10, %c0_11], %31 {strides = array<i32>} : memref<2x256xf32, #tpu.memory_space<vmem>>, vector<1x256xf32>,
    %cst_12 = arith.constant 0x7F800000 : f32
    %33 = vector.broadcast %cst_12 : f32 to vector<1x256xf32>
    %34 = arith.select %6, %29, %33 : vector<1x256xi1>, vector<1x256xf32>
    %c0_13 = arith.constant 0 : index
    %c0_14 = arith.constant 0 : index
    %35 = vector.load %arg4[%c0_13, %c0_14] : memref<2x256xf32, #tpu.memory_space<vmem>>, vector<1x256xf32>
    tpu.vector_store %arg4[%c0_13, %c0_14], %34 {strides = array<i32>} : memref<2x256xf32, #tpu.memory_space<vmem>>, vector<1x256xf32>,
    %36 = arith.extui %6 : vector<1x256xi1> to vector<1x256xi32>
    %37 = arith.sitofp %36 : vector<1x256xi32> to vector<1x256xf32>
    %c0_15 = arith.constant 0 : index
    %c0_16 = arith.constant 0 : index
    %38 = vector.load %arg5[%c0_15, %c0_16] : memref<2x256xf32, #tpu.memory_space<vmem>>, vector<1x256xf32>
    tpu.vector_store %arg5[%c0_15, %c0_16], %37 {strides = array<i32>} : memref<2x256xf32, #tpu.memory_space<vmem>>, vector<1x256xf32>,
    %c1 = arith.constant 1 : index
    %c0_17 = arith.constant 0 : index
    %c0_18 = arith.constant 0 : index
    %39 = vector.load %arg1[%c1, %c0_17, %c0_18] : memref<2x4x256xf32, #tpu.memory_space<vmem>>, vector<1x4x256xf32>
    %40 = vector.shape_cast %39 : vector<1x4x256xf32> to vector<4x256xf32>
    %41 = vector.extract_strided_slice %0 {offsets = [1, 0], sizes = [1, 256], strides = [1, 1]} : vector<2x256xi32> to vector<1x256xi32>
    %c255_i32_19 = arith.constant 255 : i32
    %42 = vector.broadcast %c255_i32_19 : i32 to vector<1x256xi32>
    %43 = arith.cmpi ne, %41, %42 : vector<1x256xi32>
    %c0_i32_20 = arith.constant 0 : i32
    %44 = vector.broadcast %c0_i32_20 : i32 to vector<1x256xi32>
    %45 = arith.select %43, %41, %44 : vector<1x256xi1>, vector<1x256xi32>
    %cst_21 = arith.constant dense<0xFF800000> : vector<256xf32>
    %46 = vector.multi_reduction <maximumf>, %40, %cst_21 [0] : vector<4x256xf32> to vector<256xf32>
    %47 = vector.shape_cast %46 : vector<256xf32> to vector<1x256xf32>
    %48 = vector.broadcast %47 : vector<1x256xf32> to vector<4x256xf32>
    %49 = arith.subf %40, %48 : vector<4x256xf32>
    %50 = math.exp %49 : vector<4x256xf32>
    %cst_22 = arith.constant dense<0.000000e+00> : vector<256xf32>
    %51 = vector.multi_reduction <add>, %50, %cst_22 [0] : vector<4x256xf32> to vector<256xf32>
    %52 = vector.shape_cast %51 : vector<256xf32> to vector<1x256xf32>
    %53 = math.log %52 : vector<1x256xf32>
    %54 = arith.addf %47, %53 : vector<1x256xf32>
    %55 = vector.broadcast %45 : vector<1x256xi32> to vector<4x256xi32>
    %56 = arith.cmpi eq, %1, %55 : vector<4x256xi32>
    %cst_23 = arith.constant 0.000000e+00 : f32
    %57 = vector.broadcast %cst_23 : f32 to vector<4x256xf32>
    %58 = arith.select %56, %40, %57 : vector<4x256xi1>, vector<4x256xf32>
    %cst_24 = arith.constant dense<0.000000e+00> : vector<256xf32>
    %59 = vector.multi_reduction <add>, %58, %cst_24 [0] : vector<4x256xf32> to vector<256xf32>
    %60 = vector.shape_cast %59 : vector<256xf32> to vector<1x256xf32>
    %cst_25 = arith.constant 0.000000e+00 : f32
    %61 = vector.broadcast %cst_25 : f32 to vector<4x256xf32>
    %62 = arith.select %56, %50, %61 : vector<4x256xi1>, vector<4x256xf32>
    %cst_26 = arith.constant dense<0.000000e+00> : vector<256xf32>
    %63 = vector.multi_reduction <add>, %62, %cst_26 [0] : vector<4x256xf32> to vector<256xf32>
    %64 = vector.shape_cast %63 : vector<256xf32> to vector<1x256xf32>
    %65 = arith.subf %54, %60 : vector<1x256xf32>
    %66 = arith.divf %64, %52 : vector<1x256xf32>
    %cst_27 = arith.constant 0.000000e+00 : f32
    %67 = vector.broadcast %cst_27 : f32 to vector<1x256xf32>
    %68 = arith.select %43, %65, %67 : vector<1x256xi1>, vector<1x256xf32>
    %c1_28 = arith.constant 1 : index
    %c0_29 = arith.constant 0 : index
    %69 = vector.load %arg3[%c1_28, %c0_29] : memref<2x256xf32, #tpu.memory_space<vmem>>, vector<1x256xf32>
    tpu.vector_store %arg3[%c1_28, %c0_29], %68 {strides = array<i32>} : memref<2x256xf32, #tpu.memory_space<vmem>>, vector<1x256xf32>,
    %cst_30 = arith.constant 0x7F800000 : f32
    %70 = vector.broadcast %cst_30 : f32 to vector<1x256xf32>
    %71 = arith.select %43, %66, %70 : vector<1x256xi1>, vector<1x256xf32>
    %c1_31 = arith.constant 1 : index
    %c0_32 = arith.constant 0 : index
    %72 = vector.load %arg4[%c1_31, %c0_32] : memref<2x256xf32, #tpu.memory_space<vmem>>, vector<1x256xf32>
    tpu.vector_store %arg4[%c1_31, %c0_32], %71 {strides = array<i32>} : memref<2x256xf32, #tpu.memory_space<vmem>>, vector<1x256xf32>,
    %73 = arith.extui %43 : vector<1x256xi1> to vector<1x256xi32>
    %74 = arith.sitofp %73 : vector<1x256xi32> to vector<1x256xf32>
    %c1_33 = arith.constant 1 : index
    %c0_34 = arith.constant 0 : index
    %75 = vector.load %arg5[%c1_33, %c0_34] : memref<2x256xf32, #tpu.memory_space<vmem>>, vector<1x256xf32>
    tpu.vector_store %arg5[%c1_33, %c0_34], %74 {strides = array<i32>} : memref<2x256xf32, #tpu.memory_space<vmem>>, vector<1x256xf32>,
    return
  }
  func.func @transform_0(%arg0: i32) -> (i32, i32, i32) {
    %c0_i32 = arith.constant 0 : i32
    %c0_i32_0 = arith.constant 0 : i32
    %c0_i32_1 = arith.constant 0 : i32
    return %c0_i32, %c0_i32_0, %arg0 : i32, i32, i32
  }
  func.func @transform_1(%arg0: i32) -> (i32, i32) {
    %c0_i32 = arith.constant 0 : i32
    %c0_i32_0 = arith.constant 0 : i32
    return %c0_i32, %arg0 : i32, i32
  }
  func.func @transform_2(%arg0: i32) -> (i32, i32) {
    %c0_i32 = arith.constant 0 : i32
    %c0_i32_0 = arith.constant 0 : i32
    return %c0_i32, %arg0 : i32, i32
  }
  func.func @transform_3(%arg0: i32) -> (i32, i32) {
    %c0_i32 = arith.constant 0 : i32
    %c0_i32_0 = arith.constant 0 : i32
    return %c0_i32, %arg0 : i32, i32
  }
  func.func @transform_4(%arg0: i32) -> (i32, i32) {
    %c0_i32 = arith.constant 0 : i32
    %c0_i32_0 = arith.constant 0 : i32
    return %c0_i32, %arg0 : i32, i32
  }
}

</mosaic_0001>

<bundles_post_ra>
// kernel: tpu_custom_call.1
= control target key start
LH: loop header
LB: loop body
LE: loop exit
PB: predicated region body
PF: predicated region fallthrough
CT: control target
= control target key end

     0   :  { %10 = vsyncpa [#allocation3], 0  ;;  %s730_s0 = inlined_call_operand.hbm [shape: f32[2,4,256], index: 0, kind: input, shape index: {}]   ;;  %s731_s1 = inlined_call_operand.hbm [shape: s32[2,256], index: 1, kind: input, shape index: {}]   ;;  %s732_s2 = inlined_call_operand.hbm [shape: f32[2,256], index: 2, kind: output, shape index: {0}]   ;;  %s733_s3 = inlined_call_operand.hbm [shape: f32[2,256], index: 3, kind: output, shape index: {1}]   ;;  %s734_s4 = inlined_call_operand.hbm [shape: f32[2,256], index: 4, kind: output, shape index: {2}]  }
   0x1   :  { %11 = vsyncpa [#allocation6], 0 }
   0x2   :  { %12 = vsyncpa [#allocation4], 0 }
   0x3   :  { %13 = vsyncpa [#allocation9], 0  ;;  %s555_s15 = smov [#allocation2]  }
   0x4   :  { %s19_s16 = sshll.u32 %s555_s15, 4  ;;  %s20_s16 = int_to_ptr.vmem [resolvable:$true] %s19_s16 }
   0x5   :  { %s455_s17 = scalar_lea.vmem %s20_s16, 256  ;;  %p460_p1 = scmp.lt.s32.totalorder %s20_s16, %s20_s16 }
   0x6   :  { %p456_p0 = scmp.ne.s32.totalorder %s20_s16, %s455_s17  ;;  %p461_p2 = scmp.lt.s32.totalorder %s455_s17, %s455_s17 }
   0x8   :  { %p462_p3 = por %p461_p2, %p460_p1 }
   0xa   :  { %p463_p4 = pnand %p462_p3, %p456_p0 }
   0xc   :  { %466 = shalt.err (!%p463_p4)
}
   0xd   :  { %s556_s18 = smov 128   ;;  %s557_s19 = smov 8  }
   0xe   :  { %25 = dma.hbm_to_vmem [thread:$0]  %s730_s0, 256, %s20_s16, [#allocation3], %s556_s18, %s556_s18, %s557_s19  }
   0xf   :  { %s558_s22 = smov [#allocation5]  }
  0x10   :  { %s32_s23 = sshll.u32 %s558_s22, 4  ;;  %s33_s23 = int_to_ptr.vmem [resolvable:$true] %s32_s23 }
  0x11   :  { %s475_s24 = scalar_lea.vmem %s33_s23, 64  ;;  %p480_p6 = scmp.lt.s32.totalorder %s33_s23, %s33_s23 }
  0x12   :  { %p476_p5 = scmp.ne.s32.totalorder %s33_s23, %s475_s24  ;;  %p481_p7 = scmp.lt.s32.totalorder %s475_s24, %s475_s24 }
  0x14   :  { %p482_p8 = por %p481_p7, %p480_p6 }
  0x16   :  { %p483_p9 = pnand %p482_p8, %p476_p5 }
  0x18   :  { %486 = shalt.err (!%p483_p9)
}
  0x19   :  { %35 = dma.hbm_to_vmem [thread:$0]  %s731_s1, 64, %s33_s23, [#allocation6]  }
  0x1a   :  { %547 = dma.done.wait [#allocation3], 256  }
  0x1b   :  { %548 = vsyncadd [#allocation3], 4294967040 }
  0x1c   :  { %549 = dma.done.wait [#allocation6], 64  }
  0x1d   :  { %550 = vsyncadd [#allocation6], 4294967232  ;;  %v559_v0 = vmov 1966171168   ;;  %v43_v2 = vlaneseq  ;;  %vm51_vm0 = vcmask 1043456   ;;  %v596_v3 = vld [vmem:[#allocation2] sm:$0xff] }
  0x1e   :  { %v166_v1 = vunpack.c.l.s4 %v559_v0  ;;  %v598_v4 = vld [vmem:[#allocation2 + $0x8] sm:$0xff]  ;;  %v602_v5 = vcombine.high %v596_v3, %v596_v3  ;;  %v52_v6 = vsel %vm51_vm0, %v596_v3, -inf  ;;  %v610_v9 = vld [vmem:[#allocation5] sm:$0xf]  ;;  %v560_v22 = vmov 0.0   ;;  %s562_s0 = smov [#allocation8]  }
  0x1f   :  { %v608_v8 = vcombine.high %v598_v4, %v598_v4  ;;  %v53_v10 = vrot.slane %v52_v6, 4  ;;  %v217_v11 = vsel %vm51_vm0, %v598_v4, -inf  ;;  %v614_v12 = vshrl.u32 %v43_v2, 7  ;;  %s387_s1 = sshll.u32 %s562_s0, 4  ;;  %s563_s27 = smov [#allocation10]   ;;  %s388_s1 = int_to_ptr.vmem [resolvable:$true] %s387_s1 }
  0x20   :  { %v167_v7 = vunpack.c.0.s8 %v166_v1  ;;  %v59_v13 = vsel %vm51_vm0, %v602_v5, -inf  ;;  %v218_v16 = vrot.slane %v217_v11, 4  ;;  %vm46_vm1 = vcmp.ne.s32.totalorder %v610_v9, 255  ;;  %s397_s28 = sshll.u32 %s563_s27, 4  ;;  %s564_s29 = smov [#allocation7]   ;;  %s398_s28 = int_to_ptr.vmem [resolvable:$true] %s397_s28 }
  0x21   :  { %v54_v14 = vmax.f32 %v52_v6, %v53_v10  ;;  %v60_v15 = vrot.slane %v59_v13, 4  ;;  %v224_v18 = vsel %vm51_vm0, %v608_v8, -inf  ;;  %v414_v23 = vsel %vm46_vm1, 1.0, %v560_v22  ;;  %s377_s30 = sshll.u32 %s564_s29, 4  ;;  %s487_s5 = scalar_lea.vmem %s388_s1, 64  ;;  %s378_s30 = int_to_ptr.vmem [resolvable:$true] %s377_s30 }
  0x22   :  { %v620_v17 = vsub.s32 %v167_v7, %v614_v12  ;;  %v219_v21 = vmax.f32 %v217_v11, %v218_v16  ;;  %v225_v24 = vrot.slane %v224_v18, 4  ;;  %vm626_vm2 = vcmp.lt.s32.totalorder %v43_v2, 256  ;;  %p488_p10 = scmp.ne.s32.totalorder %s388_s1, %s487_s5  ;;  %p492_p11 = scmp.lt.s32.totalorder %s388_s1, %s388_s1 }
  0x23   :  { %v55_v19 = vrot.slane %v54_v14, 2  ;;  %v61_v20 = vmax.f32 %v59_v13, %v60_v15  ;;  %v98_v44 = vsub.s32 0, %v614_v12  ;;  %v47_v47 = vsel %vm46_vm1, %v610_v9, 0  ;;  %p493_p12 = scmp.lt.s32.totalorder %s487_s5, %s487_s5 }
  0x24   :  { %v220_v28 = vrot.slane %v219_v21, 2  ;;  %v226_v29 = vmax.f32 %v224_v18, %v225_v24  ;;  %v209_v30 = vrot.slane %v414_v23, %v620_v17  ;;  %v102_v48 = vsub.s32 2, %v614_v12 }
  0x25   :  { %v56_v25 = vmax.f32 %v54_v14, %v55_v19  ;;  %v62_v26 = vrot.slane %v61_v20, 2  ;;  %v99_v51 = vrot.slane %v47_v47, %v98_v44  ;;  %v263_v54 = vsub.s32 1, %v614_v12  ;;  %p494_p13 = por %p493_p12, %p492_p11 }
  0x26   :  { %v221_v33 = vmax.f32 %v219_v21, %v220_v28  ;;  %v227_v34 = vrot.slane %v226_v29, 2  ;;  %211 = vst.msk [vmem:[#allocation10] ss:$2 sm:$0x3] %vm626_vm2, %v209_v30  ;;  %v367_v42 = vcombine.high %v209_v30, %v209_v30  ;;  %v103_v53 = vrot.slane %v47_v47, %v102_v48 }
  0x27   :  { %v57_v31 = vrot.slane %v56_v25, 1  ;;  %v63_v32 = vmax.f32 %v61_v20, %v62_v26  ;;  %v107_v56 = vrot.slane %v99_v51, %v98_v44  ;;  %v267_v57 = vsub.s32 3, %v614_v12  ;;  %p495_p0 = pnand %p494_p13, %p488_p10 }
  0x28   :  { %v222_v37 = vrot.slane %v221_v33, 1  ;;  %v228_v38 = vmax.f32 %v226_v29, %v227_v34  ;;  %370 = vst.msk [vmem:[#allocation10 + $0x1] ss:$2 sm:$0x3] %vm626_vm2, %v367_v42  ;;  %v111_v58 = vrot.slane %v103_v53, %v98_v44  ;;  %v264_v59 = vrot.slane %v47_v47, %v263_v54 }
  0x29   :  { %v633_v35 = vmax.f32 %v56_v25, %v57_v31  ;;  %v64_v36 = vrot.slane %v63_v32, 1  ;;  %vm112_vm3 = vcmp.eq.s32.totalorder %v614_v12, %v107_v56  ;;  %v268_v60 = vrot.slane %v47_v47, %v267_v57 }
  0x2a   :  { %v637_v40 = vmax.f32 %v221_v33, %v222_v37  ;;  %v229_v41 = vrot.slane %v228_v38, 1  ;;  %vm658_vm4 = vcmp.eq.s32.totalorder %v614_v12, %v111_v58  ;;  %v272_v62 = vrot.slane %v264_v59, %v263_v54 }
  0x2b   :  { %v635_v39 = vmax.f32 %v63_v32, %v64_v36  ;;  %v114_v63 = vsel %vm112_vm3, %v596_v3, 0.0  ;;  %v276_v0 = vrot.slane %v268_v60, %v263_v54  ;;  %v115_v1 = vsel %vm658_vm4, %v602_v5, 0.0 }
  0x2c   :  { %v642_v45 = vmax.f32 %v228_v38, %v229_v41  ;;  %v116_v2 = vsel %vm51_vm0, %v114_v63, 0.0  ;;  %vm277_vm5 = vcmp.eq.s32.totalorder %v614_v12, %v272_v62  ;;  %v123_v5 = vsel %vm51_vm0, %v115_v1, 0.0 }
  0x2d   :  { %v68_v43 = vcombine.low %v633_v35, %v635_v39  ;;  %vm670_vm6 = vcmp.eq.s32.totalorder %v614_v12, %v276_v0  ;;  %v117_v15 = vrot.slane %v116_v2, 4  ;;  %v279_v21 = vsel %vm277_vm5, %v598_v4, 0.0 }
  0x2e   :  { %v233_v49 = vcombine.low %v637_v40, %v642_v45  ;;  %v124_v30 = vrot.slane %v123_v5, 4  ;;  %v280_v38 = vsel %vm670_vm6, %v608_v8, 0.0 }
  0x2f   :  { %v70_v46 = vsub.f32 %v596_v3, %v68_v43  ;;  %v288_v8 = vsel %vm51_vm0, %v280_v38, 0.0  ;;  %v118_v63 = vadd.f32 %v117_v15, %v116_v2 }
  0x30   :  { %v235_v52 = vsub.f32 %v598_v4, %v233_v49  ;;  %v281_v49 = vsel %vm51_vm0, %v279_v21, 0.0  ;;  %v289_v13 = vrot.slane %v288_v8, 4 }
  0x31   :  { %v71_v50 = vmul.f32 1.442695, %v70_v46  ;;  %v282_v0 = vrot.slane %v281_v49, 4 }
  0x32   :  { %v236_v55 = vmul.f32 1.442695, %v235_v52 }
  0x33   :  { %427 = vpow2.f32 %v71_v50  ;;  %v283_v2 = vadd.f32 %v282_v0, %v281_v49 }
  0x34   :  { %429 = vpow2.f32 %v236_v55 }
  0x40   :  { %v428_v6 = vpop.eup %427 }
  0x41   :  { %v74_v7 = vcombine.high %v428_v6, %v428_v6  ;;  %v76_v10 = vsel %vm51_vm0, %v428_v6, 0.0  ;;  %v130_v11 = vsel %vm112_vm3, %v428_v6, 0.0  ;;  %v430_v16 = vpop.eup %429 }
  0x42   :  { %v77_v3 = vrot.slane %v76_v10, 4  ;;  %v132_v14 = vsel %vm51_vm0, %v130_v11, 0.0  ;;  %v239_v25 = vcombine.high %v430_v16, %v430_v16  ;;  %v241_v28 = vsel %vm51_vm0, %v430_v16, 0.0 }
  0x43   :  { %v83_v18 = vsel %vm51_vm0, %v74_v7, 0.0  ;;  %v131_v19 = vsel %vm658_vm4, %v74_v7, 0.0  ;;  %v133_v20 = vrot.slane %v132_v14, 4  ;;  %v295_v29 = vsel %vm277_vm5, %v430_v16, 0.0 }
  0x44   :  { %v78_v22 = vadd.f32 %v77_v3, %v76_v10  ;;  %v84_v23 = vrot.slane %v83_v18, 4  ;;  %v139_v24 = vsel %vm51_vm0, %v131_v19, 0.0  ;;  %v242_v33 = vrot.slane %v241_v28, 4 }
  0x45   :  { %v140_v26 = vrot.slane %v139_v24, 4  ;;  %v248_v34 = vsel %vm51_vm0, %v239_v25, 0.0  ;;  %v134_v36 = vadd.f32 %v133_v20, %v132_v14  ;;  %v296_v4 = vsel %vm670_vm6, %v239_v25, 0.0 }
  0x46   :  { %v79_v31 = vrot.slane %v78_v22, 2  ;;  %v85_v32 = vadd.f32 %v84_v23, %v83_v18  ;;  %v249_v37 = vrot.slane %v248_v34, 4  ;;  %v243_v43 = vadd.f32 %v242_v33, %v241_v28 }
  0x47   :  { %v297_v44 = vsel %vm51_vm0, %v295_v29, 0.0  ;;  %v141_v46 = vadd.f32 %v140_v26, %v139_v24  ;;  %v304_v53 = vsel %vm51_vm0, %v296_v4, 0.0  ;;  %v135_v54 = vrot.slane %v134_v36, 2 }
  0x48   :  { %v80_v41 = vadd.f32 %v79_v31, %v78_v22  ;;  %v86_v42 = vrot.slane %v85_v32, 2  ;;  %v250_v47 = vadd.f32 %v249_v37, %v248_v34  ;;  %v298_v48 = vrot.slane %v297_v44, 4 }
  0x49   :  { %v244_v52 = vrot.slane %v243_v43, 2  ;;  %v305_v60 = vrot.slane %v304_v53, 4  ;;  %v142_v61 = vrot.slane %v141_v46, 2  ;;  %v125_v11 = vadd.f32 %v124_v30, %v123_v5 }
  0x4a   :  { %v81_v50 = vrot.slane %v80_v41, 1  ;;  %v87_v51 = vadd.f32 %v86_v42, %v85_v32  ;;  %v251_v55 = vrot.slane %v250_v47, 2  ;;  %v299_v56 = vadd.f32 %v298_v48, %v297_v44 }
  0x4b   :  { %v245_v59 = vadd.f32 %v244_v52, %v243_v43  ;;  %v306_v7 = vadd.f32 %v305_v60, %v304_v53  ;;  %v136_v3 = vadd.f32 %v135_v54, %v134_v36  ;;  %v119_v20 = vrot.slane %v118_v63, 2 }
  0x4c   :  { %v82_v57 = vadd.f32 %v81_v50, %v80_v41  ;;  %v88_v58 = vrot.slane %v87_v51, 1  ;;  %v252_v62 = vadd.f32 %v251_v55, %v250_v47  ;;  %v300_v16 = vrot.slane %v299_v56, 2 }
  0x4d   :  { %v246_v6 = vrot.slane %v245_v59, 1  ;;  %v307_v19 = vrot.slane %v306_v7, 2  ;;  %v143_v21 = vadd.f32 %v142_v61, %v141_v46  ;;  %v126_v15 = vrot.slane %v125_v11, 2 }
  0x4e   :  { %v89_v1 = vadd.f32 %v88_v58, %v87_v51  ;;  %431 = vrcp.f32 %v82_v57  ;;  %v253_v10 = vrot.slane %v252_v62, 1  ;;  %v290_v22 = vadd.f32 %v289_v13, %v288_v8 }
  0x4f   :  { %433 = vlog2.f32 %v82_v57  ;;  %v247_v14 = vadd.f32 %v246_v6, %v245_v59  ;;  %v137_v23 = vrot.slane %v136_v3, 1  ;;  %v301_v24 = vadd.f32 %v300_v16, %v299_v56 }
  0x50   :  { %435 = vrcp.f32 %v89_v1  ;;  %v254_v18 = vadd.f32 %v253_v10, %v252_v62  ;;  %v308_v25 = vadd.f32 %v307_v19, %v306_v7  ;;  %v120_v5 = vadd.f32 %v119_v20, %v118_v63 }
  0x51   :  { %437 = vlog2.f32 %v89_v1  ;;  %v144_v26 = vrot.slane %v143_v21, 1  ;;  %v284_v28 = vrot.slane %v283_v2, 2  ;;  %v127_v29 = vadd.f32 %v126_v15, %v125_v11 }
  0x52   :  { %439 = vrcp.f32 %v247_v14  ;;  %v291_v30 = vrot.slane %v290_v22, 2  ;;  %v138_v31 = vadd.f32 %v137_v23, %v136_v3  ;;  %v561_v32 = vmov 1983009808  }
  0x53   :  { %441 = vrcp.f32 %v254_v18  ;;  %v156_v33 = vunpack.c.l.s4 %v561_v32  ;;  %v302_v34 = vrot.slane %v301_v24, 1  ;;  %v309_v36 = vrot.slane %v308_v25, 1 }
  0x54   :  { %443 = vlog2.f32 %v247_v14  ;;  %v121_v37 = vrot.slane %v120_v5, 1  ;;  %v145_v4 = vadd.f32 %v144_v26, %v143_v21  ;;  %v285_v38 = vadd.f32 %v284_v28, %v283_v2 }
  0x55   :  { %445 = vlog2.f32 %v254_v18  ;;  %v128_v42 = vrot.slane %v127_v29, 1  ;;  %v292_v43 = vadd.f32 %v291_v30, %v290_v22  ;;  %v157_v47 = vunpack.c.0.s8 %v156_v33 }
  0x56   :  { %v303_v48 = vadd.f32 %v302_v34, %v301_v24  ;;  %v310_v50 = vadd.f32 %v309_v36, %v308_v25  ;;  %v122_v52 = vadd.f32 %v121_v37, %v120_v5  ;;  %v286_v55 = vrot.slane %v285_v38, 1 }
  0x57   :  { %v129_v58 = vadd.f32 %v128_v42, %v127_v29  ;;  %v293_v59 = vrot.slane %v292_v43, 1  ;;  %v160_v61 = vsub.s32 %v157_v47, %v614_v12 }
  0x58   :  { %v287_v3 = vadd.f32 %v286_v55, %v285_v38 }
  0x5b   :  { %v432_v41 = vpop.eup %431 }
  0x5c   :  { %v434_v44 = vpop.eup %433  ;;  %v149_v46 = vmul.f32 %v432_v41, %v138_v31 }
  0x5d   :  { %v436_v49 = vpop.eup %435  ;;  %v91_v51 = vmul.f32 0.6931472, %v434_v44 }
  0x5e   :  { %v438_v53 = vpop.eup %437  ;;  %v151_v54 = vmul.f32 %v436_v49, %v145_v4 }
  0x5f   :  { %v440_v56 = vpop.eup %439  ;;  %v93_v8 = vmul.f32 0.6931472, %v438_v53  ;;  %v94_v57 = vadd.f32 %v91_v51, %v633_v35  ;;  %v294_v35 = vadd.f32 %v293_v59, %v292_v43 }
  0x60   :  { %v442_v60 = vpop.eup %441  ;;  %v180_v62 = vcombine.low %v149_v46, %v151_v54  ;;  %v314_v63 = vmul.f32 %v440_v56, %v303_v48 }
  0x61   :  { %v444_v0 = vpop.eup %443  ;;  %v316_v1 = vmul.f32 %v442_v60, %v310_v50  ;;  %v95_v6 = vadd.f32 %v93_v8, %v635_v39  ;;  %v146_v7 = vsub.f32 %v94_v57, %v122_v52 }
  0x62   :  { %v446_v10 = vpop.eup %445  ;;  %v187_v11 = vrot.slane %v180_v62, %v160_v61  ;;  %v256_v13 = vmul.f32 0.6931472, %v444_v0 }
  0x63   :  { %v344_v14 = vcombine.low %v314_v63, %v316_v1  ;;  %v147_v16 = vsub.f32 %v95_v6, %v129_v58  ;;  %v258_v18 = vmul.f32 0.6931472, %v446_v10 }
  0x64   :  { %v189_v19 = vsel %vm46_vm1, %v187_v11, inf  ;;  %v259_v12 = vadd.f32 %v256_v13, %v637_v40 }
  0x65   :  { %v197_v20 = vrot.slane %v189_v19, %v620_v17  ;;  %v351_v21 = vrot.slane %v344_v14, %v160_v61  ;;  %v154_v2 = vcombine.low %v146_v7, %v147_v16  ;;  %v260_v39 = vadd.f32 %v258_v18, %v642_v45 }
  0x66   :  { %v311_v15 = vsub.f32 %v259_v12, %v287_v3 }
  0x67   :  { %199 = vst.msk [vmem:[#allocation8] ss:$2 sm:$0x3] %vm626_vm2, %v197_v20  ;;  %v352_v22 = vrot.slane %v351_v21, 7  ;;  %v161_v23 = vrot.slane %v154_v2, %v160_v61  ;;  %v312_v24 = vsub.f32 %v260_v39, %v294_v35 }
  0x69   :  { %v354_v25 = vsel %vm46_vm1, %v352_v22, inf  ;;  %v163_v5 = vsel %vm46_vm1, %v161_v23, 0.0  ;;  %v319_v40 = vcombine.low %v311_v15, %v312_v24 }
  0x6a   :  { %v362_v26 = vrot.slane %v354_v25, %v620_v17  ;;  %v171_v45 = vrot.slane %v163_v5, %v620_v17 }
  0x6b   :  { %v326_v28 = vrot.slane %v319_v40, %v160_v61 }
  0x6c   :  { %v363_v29 = vcombine.high %v362_v26, %v362_v26  ;;  %177 = vst.msk [vmem:[#allocation7] ss:$2 sm:$0x3] %vm626_vm2, %v171_v45 }
  0x6d   :  { %v327_v30 = vrot.slane %v326_v28, 7 }
  0x6e   :  { %366 = vst.msk [vmem:[#allocation8 + $0x1] ss:$2 sm:$0x3] %vm626_vm2, %v363_v29 }
  0x6f   :  { %v329_v31 = vsel %vm46_vm1, %v327_v30, 0.0 }
  0x70   :  { %498 = shalt.err (!%p495_p0)
}
  0x71   :  { %390 = dma.vmem_to_hbm [thread:$0]  %s388_s1, 64, %s733_s3, [#allocation9]   ;;  %v337_v32 = vrot.slane %v329_v31, %v620_v17 }
  0x72   :  { %s507_s8 = scalar_lea.vmem %s398_s28, 64  ;;  %p512_p2 = scmp.lt.s32.totalorder %s398_s28, %s398_s28 }
  0x73   :  { %p508_p1 = scmp.ne.s32.totalorder %s398_s28, %s507_s8  ;;  %p513_p3 = scmp.lt.s32.totalorder %s507_s8, %s507_s8 }
  0x75   :  { %p514_p4 = por %p513_p3, %p512_p2 }
  0x77   :  { %p515_p5 = pnand %p514_p4, %p508_p1 }
  0x79   :  { %518 = shalt.err (!%p515_p5)
}
  0x7a   :  { %400 = dma.vmem_to_hbm [thread:$0]  %s398_s28, 64, %s734_s4, [#allocation9]   ;;  %v338_v9 = vcombine.high %v337_v32, %v337_v32 }
  0x7b   :  { %s527_s11 = scalar_lea.vmem %s378_s30, 64  ;;  %p532_p7 = scmp.lt.s32.totalorder %s378_s30, %s378_s30 }
  0x7c   :  { %341 = vst.msk [vmem:[#allocation7 + $0x1] ss:$2 sm:$0x3] %vm626_vm2, %v338_v9  ;;  %p528_p6 = scmp.ne.s32.totalorder %s378_s30, %s527_s11  ;;  %p533_p8 = scmp.lt.s32.totalorder %s527_s11, %s527_s11 }
  0x7e   :  { %p534_p9 = por %p533_p8, %p532_p7 }
  0x80   :  { %p535_p10 = pnand %p534_p9, %p528_p6 }
  0x82   :  { %538 = shalt.err (!%p535_p10)
}
  0x83   :  { %380 = dma.vmem_to_hbm [thread:$0]  %s378_s30, 64, %s732_s2, [#allocation4]  }
  0x84   :  { %551 = dma.done.wait [#allocation4], 64  }
  0x85   :  { %552 = vsyncadd [#allocation4], 4294967232 }
  0x86   :  { %553 = dma.done.wait [#allocation9], 128  }
  0x87   :  { %554 = vsyncadd [#allocation9], 4294967168 }
  0x88   :  { %410 = vsyncpa [#allocation3], 1 }
  0x89   :  { %411 = vsyncpa [#allocation6], 1 }
  0x8a   :  { %412 = vsyncpa [#allocation4], 1 }
  0x8b   :  { %413 = vsyncpa [#allocation9], 1 }

</bundles_post_ra>
